<compile_context>
chip_gen: v6e
topology: v6e:2x2x1
jax: 0.10.0
libtpu: 0.0.40
codegen_flags: <defaults>
</compile_context>

<pallas_src>
import jax
import jax.numpy as jnp
from jax.experimental import pallas as pl
from jax.experimental.pallas import tpu as pltpu


def _round_up(x, m):
    return (x + m - 1) // m * m


def _device_kind():
    try:
        return jax.devices()[0].device_kind.lower()
    except Exception:
        return ""


def _make_nli_kernel(inv_s, d, feat_dtype):
    """inv_s = 1 / true_seq_len; d = (padded) encoder dim; feat_dtype = weight dtype."""

    def nli_kernel(prem_ref, hyp_ref, w1_ref, b1_ref, w2_ref, b2_ref,
                   out_ref, u_acc, v_acc):
        s = pl.program_id(1)

        @pl.when(s == 0)
        def _init():
            u_acc[...] = jnp.zeros_like(u_acc)
            v_acc[...] = jnp.zeros_like(v_acc)

        # Streaming sum over this seq tile.  Upcast bf16 -> f32 before the
        # reduce so accumulation stays exact on long sequences; the XLU
        # reduce + VPU add hide under the HBM DMAs.
        u_acc[...] += jnp.sum(prem_ref[...].astype(jnp.float32), axis=1)
        v_acc[...] += jnp.sum(hyp_ref[...].astype(jnp.float32), axis=1)

        @pl.when(s == pl.num_programs(1) - 1)
        def _finalize():
            # Mean finalize (1/S uses the TRUE seq length, so zero-padded
            # seq positions contribute nothing).
            u = u_acc[...] * inv_s
            v = v_acc[...] * inv_s
            absd = jnp.abs(u - v)
            prod = u * v

            def c(x):  # match the weight dtype on the MXU inputs
                return x.astype(feat_dtype)

            # combine([u, v, |u-v|, u*v]) @ w1 as 4 dots over aligned row
            # slices of w1 (D padded to a multiple of 8 -> free views).
            h = (jnp.dot(c(u), w1_ref[0 * d:1 * d, :],
                         preferred_element_type=jnp.float32)
                 + jnp.dot(c(v), w1_ref[1 * d:2 * d, :],
                           preferred_element_type=jnp.float32)
                 + jnp.dot(c(absd), w1_ref[2 * d:3 * d, :],
                           preferred_element_type=jnp.float32)
                 + jnp.dot(c(prod), w1_ref[3 * d:4 * d, :],
                           preferred_element_type=jnp.float32))

            h = jnp.maximum(h + b1_ref[...], 0.0)                 # fc1 + ReLU
            out_ref[...] = (jnp.dot(c(h), w2_ref[...],
                                    preferred_element_type=jnp.float32)
                            + b2_ref[...])                        # fc2 (padded O)

    return nli_kernel


def nli_classifier_forward(premise, hypothesis, params, *, bt=None, st=None,
                           input_dtype=jnp.bfloat16, weights_dtype=None):
    """premise, hypothesis: [B, S, D] float32.  Returns logits [B, O]."""
    w1, b1, w2, b2 = params["w1"], params["b1"], params["w2"], params["b2"]
    B, S, D = premise.shape
    H = w1.shape[1]
    O = w2.shape[1]
    assert w1.shape[0] == 4 * D

    dk = _device_kind()

    # --- pad D to a multiple of 8 so in-kernel w1 row slices are aligned views.
    d_pad = _round_up(D, 8)
    if d_pad != D:
        pd = d_pad - D
        premise = jnp.pad(premise, ((0, 0), (0, 0), (0, pd)))
        hypothesis = jnp.pad(hypothesis, ((0, 0), (0, 0), (0, pd)))
        w1 = jnp.concatenate(
            [jnp.pad(w1[k * D:(k + 1) * D], ((0, pd), (0, 0))) for k in range(4)],
            axis=0)

    # --- weight dtype: auto-bf16 once resident f32 weights get large
    #     (v7x has only 64 MiB VMEM; its MXU is bf16-native anyway).
    if weights_dtype is None:
        w_f32_bytes = (w1.size + w2.size) * 4
        weights_dtype = jnp.bfloat16 if w_f32_bytes > (16 << 20) else jnp.float32
    w1 = w1.astype(weights_dtype)
    w2 = w2.astype(weights_dtype)

    # --- batch tile: split across the two TensorCores on v7x-class parts.
    if bt is None:
        bt = B
        if "v7" in dk and B >= 16 and (B // 2) % 8 == 0:
            bt = B // 2
    assert B % bt == 0 and (bt % 8 == 0 or bt == B)

    # --- seq tile from a per-generation block-byte budget (inputs are bf16).
    itemsize = jnp.dtype(input_dtype).itemsize
    if st is None:
        target = (8 << 20) if ("v7" in dk or "v6" in dk) else (3 << 20)
        st = max(8, (target // max(1, bt * d_pad * itemsize)) // 8 * 8)
        st = min(st, _round_up(S, 8))
    assert st % 8 == 0

    # --- zero-pad S up to a multiple of st (mean uses true S, stays exact).
    s_pad = _round_up(S, st)
    if s_pad != S:
        premise = jnp.pad(premise, ((0, 0), (0, s_pad - S), (0, 0)))
        hypothesis = jnp.pad(hypothesis, ((0, 0), (0, s_pad - S), (0, 0)))

    # --- stream inputs as bf16 (accumulation is f32 inside the kernel).
    prem = premise.astype(input_dtype)
    hyp = hypothesis.astype(input_dtype)

    # --- lane-dense output: pad fc2 columns with zeros to a multiple of 128.
    o_pad = _round_up(O, 128)
    w2_p = jnp.pad(w2, ((0, 0), (0, o_pad - O)))
    b2_p = jnp.pad(b2, (0, o_pad - O)).reshape(1, o_pad).astype(jnp.float32)
    b1_2d = b1.reshape(1, H).astype(jnp.float32)

    kernel = _make_nli_kernel(1.0 / S, d_pad, weights_dtype)
    grid = (B // bt, s_pad // st)

    # --- explicit VMEM budget: 2 inputs x 2 bufs x block + resident weights
    #     + double-buffered output + accumulators, with headroom; capped per
    #     generation (v7x physical VMEM is 64 MiB).
    block_bytes = bt * st * d_pad * itemsize
    w_bytes = (w1.size + w2_p.size) * jnp.dtype(weights_dtype).itemsize
    needed = (4 * block_bytes + w_bytes + 2 * bt * o_pad * 4
              + 2 * bt * d_pad * 4 + 2 * (H + o_pad) * 4)
    cap = (56 << 20) if "v7" in dk else (100 << 20)
    vmem_limit = int(min(max(needed + (4 << 20), 32 << 20), cap))

    out = pl.pallas_call(
        kernel,
        out_shape=jax.ShapeDtypeStruct((B, o_pad), jnp.float32),
        grid_spec=pltpu.PrefetchScalarGridSpec(
            num_scalar_prefetch=0,
            grid=grid,
            in_specs=[
                pl.BlockSpec((bt, st, d_pad), lambda b, s: (b, s, 0)),  # premise
                pl.BlockSpec((bt, st, d_pad), lambda b, s: (b, s, 0)),  # hypothesis
                pl.BlockSpec((4 * d_pad, H), lambda b, s: (0, 0)),      # w1 (resident)
                pl.BlockSpec((1, H), lambda b, s: (0, 0)),              # b1
                pl.BlockSpec((H, o_pad), lambda b, s: (0, 0)),          # w2 (padded)
                pl.BlockSpec((1, o_pad), lambda b, s: (0, 0)),          # b2 (padded)
            ],
            out_specs=pl.BlockSpec((bt, o_pad), lambda b, s: (b, 0)),
            scratch_shapes=[
                pltpu.VMEM((bt, d_pad), jnp.float32),   # running sum of u
                pltpu.VMEM((bt, d_pad), jnp.float32),   # running sum of v
            ],
        ),
        compiler_params=pltpu.CompilerParams(
            dimension_semantics=("parallel", "arbitrary"),
            vmem_limit_bytes=vmem_limit),
    )(prem, hyp, w1, b1_2d, w2_p, b2_p)

    return out[:, :O]


def reference_forward(premise, hypothesis, params):
    """Plain-JAX reference matching the PyTorch forward semantics."""
    u = jnp.mean(premise, axis=1)
    v = jnp.mean(hypothesis, axis=1)
    combined = jnp.concatenate([u, v, jnp.abs(u - v), u * v], axis=1)
    h = jax.nn.relu(combined @ params["w1"] + params["b1"])
    return h @ params["w2"] + params["b2"]


if __name__ == "__main__":
    # Small shapes consistent with the module (batch, seq, input_dim, hidden, out).
    B, S, D = 8, 32, 32
    H, O = 64, 3

    key = jax.random.PRNGKey(0)
    k_prem, k_hyp, k_w1, k_b1, k_w2, k_b2 = jax.random.split(key, 6)

    premise = jax.random.normal(k_prem, (B, S, D), dtype=jnp.float32)
    hypothesis = jax.random.normal(k_hyp, (B, S, D), dtype=jnp.float32)

    params = {
        "w1": jax.random.normal(k_w1, (4 * D, H), dtype=jnp.float32) * 0.05,
        "b1": jax.random.normal(k_b1, (H,), dtype=jnp.float32) * 0.05,
        "w2": jax.random.normal(k_w2, (H, O), dtype=jnp.float32) * 0.05,
        "b2": jax.random.normal(k_b2, (O,), dtype=jnp.float32) * 0.05,
    }

    # st=8 so the demo actually exercises the streaming seq grid (4 steps).
    logits = jax.block_until_ready(
        nli_classifier_forward(premise, hypothesis, params, st=8))
    assert logits.shape == (B, O)

    # Tight check vs a reference fed the same bf16-quantized inputs
    # (the only precision loss is the bf16 streaming cast; everything
    # downstream is f32 in both paths).
    prem_q = premise.astype(jnp.bfloat16).astype(jnp.float32)
    hyp_q = hypothesis.astype(jnp.bfloat16).astype(jnp.float32)
    ref_q = reference_forward(prem_q, hyp_q, params)
    assert jnp.allclose(logits, ref_q, atol=5e-5, rtol=5e-5)

    # Loose check vs the full-f32 reference (bounds the bf16 input quantization).
    ref_f32 = reference_forward(premise, hypothesis, params)
    assert jnp.allclose(logits, ref_f32, atol=5e-2, rtol=5e-2)

    print("KERNEL_OK")
</pallas_src>

<mosaic_0001>
module attributes {stable_mosaic.version = 11 : i64} {
  func.func @nli_kernel(%arg0: i32, %arg1: i32, %arg2: memref<8x8x32xbf16, #tpu.memory_space<vmem>>, %arg3: memref<8x8x32xbf16, #tpu.memory_space<vmem>>, %arg4: memref<128x64xf32, #tpu.memory_space<vmem>>, %arg5: memref<1x64xf32, #tpu.memory_space<vmem>>, %arg6: memref<64x128xf32, #tpu.memory_space<vmem>>, %arg7: memref<1x128xf32, #tpu.memory_space<vmem>>, %arg8: memref<8x128xf32, #tpu.memory_space<vmem>>, %arg9: memref<8x32xf32, #tpu.memory_space<vmem>>, %arg10: memref<8x32xf32, #tpu.memory_space<vmem>>) attributes {dimension_semantics = [#tpu.dimension_semantics<parallel>, #tpu.dimension_semantics<arbitrary>], iteration_bounds = array<i64: 1, 4>, scalar_prefetch = 0 : i64, scratch_operands = 2 : i64, tpu.core_type = #tpu.core_type<tc>, window_params = [{transform_indices = @transform_0, window_bounds = array<i64: 8, 8, 32>}, {transform_indices = @transform_1, window_bounds = array<i64: 8, 8, 32>}, {pipeline_mode = #tpu.pipeline_mode<synchronous>, transform_indices = @transform_2, window_bounds = array<i64: 128, 64>}, {pipeline_mode = #tpu.pipeline_mode<synchronous>, transform_indices = @transform_3, window_bounds = array<i64: 1, 64>}, {pipeline_mode = #tpu.pipeline_mode<synchronous>, transform_indices = @transform_4, window_bounds = array<i64: 64, 128>}, {pipeline_mode = #tpu.pipeline_mode<synchronous>, transform_indices = @transform_5, window_bounds = array<i64: 1, 128>}, {transform_indices = @transform_6, window_bounds = array<i64: 8, 128>}]} {
    %c0_i32 = arith.constant 0 : i32
    %0 = arith.cmpi eq, %arg1, %c0_i32 : i32
    %1 = arith.extui %0 : i1 to i32
    %c0_i32_0 = arith.constant 0 : i32
    %2 = arith.cmpi ne, %1, %c0_i32_0 : i32
    scf.if %2 {
      %cst_16 = arith.constant 0.000000e+00 : f32
      %18 = vector.broadcast %cst_16 : f32 to vector<8x32xf32>
      %c0_17 = arith.constant 0 : index
      %c0_18 = arith.constant 0 : index
      %19 = vector.load %arg9[%c0_17, %c0_18] : memref<8x32xf32, #tpu.memory_space<vmem>>, vector<8x32xf32>
      tpu.vector_store %arg9[%c0_17, %c0_18], %18 {strides = array<i32>} : memref<8x32xf32, #tpu.memory_space<vmem>>, vector<8x32xf32>,
      %cst_19 = arith.constant 0.000000e+00 : f32
      %20 = vector.broadcast %cst_19 : f32 to vector<8x32xf32>
      %c0_20 = arith.constant 0 : index
      %c0_21 = arith.constant 0 : index
      %21 = vector.load %arg10[%c0_20, %c0_21] : memref<8x32xf32, #tpu.memory_space<vmem>>, vector<8x32xf32>
      tpu.vector_store %arg10[%c0_20, %c0_21], %20 {strides = array<i32>} : memref<8x32xf32, #tpu.memory_space<vmem>>, vector<8x32xf32>,
    } else {
    }
    %c0 = arith.constant 0 : index
    %c0_1 = arith.constant 0 : index
    %3 = vector.load %arg9[%c0, %c0_1] : memref<8x32xf32, #tpu.memory_space<vmem>>, vector<8x32xf32>
    %c0_2 = arith.constant 0 : index
    %c0_3 = arith.constant 0 : index
    %c0_4 = arith.constant 0 : index
    %4 = vector.load %arg2[%c0_2, %c0_3, %c0_4] : memref<8x8x32xbf16, #tpu.memory_space<vmem>>, vector<8x8x32xbf16>
    %5 = arith.extf %4 : vector<8x8x32xbf16> to vector<8x8x32xf32>
    %cst = arith.constant dense<0.000000e+00> : vector<8x32xf32>
    %6 = vector.multi_reduction <add>, %5, %cst [1] : vector<8x8x32xf32> to vector<8x32xf32>
    %7 = arith.addf %3, %6 : vector<8x32xf32>
    %c0_5 = arith.constant 0 : index
    %c0_6 = arith.constant 0 : index
    %8 = vector.load %arg9[%c0_5, %c0_6] : memref<8x32xf32, #tpu.memory_space<vmem>>, vector<8x32xf32>
    tpu.vector_store %arg9[%c0_5, %c0_6], %7 {strides = array<i32>} : memref<8x32xf32, #tpu.memory_space<vmem>>, vector<8x32xf32>,
    %c0_7 = arith.constant 0 : index
    %c0_8 = arith.constant 0 : index
    %9 = vector.load %arg10[%c0_7, %c0_8] : memref<8x32xf32, #tpu.memory_space<vmem>>, vector<8x32xf32>
    %c0_9 = arith.constant 0 : index
    %c0_10 = arith.constant 0 : index
    %c0_11 = arith.constant 0 : index
    %10 = vector.load %arg3[%c0_9, %c0_10, %c0_11] : memref<8x8x32xbf16, #tpu.memory_space<vmem>>, vector<8x8x32xbf16>
    %11 = arith.extf %10 : vector<8x8x32xbf16> to vector<8x8x32xf32>
    %cst_12 = arith.constant dense<0.000000e+00> : vector<8x32xf32>
    %12 = vector.multi_reduction <add>, %11, %cst_12 [1] : vector<8x8x32xf32> to vector<8x32xf32>
    %13 = arith.addf %9, %12 : vector<8x32xf32>
    %c0_13 = arith.constant 0 : index
    %c0_14 = arith.constant 0 : index
    %14 = vector.load %arg10[%c0_13, %c0_14] : memref<8x32xf32, #tpu.memory_space<vmem>>, vector<8x32xf32>
    tpu.vector_store %arg10[%c0_13, %c0_14], %13 {strides = array<i32>} : memref<8x32xf32, #tpu.memory_space<vmem>>, vector<8x32xf32>,
    %c3_i32 = arith.constant 3 : i32
    %15 = arith.cmpi eq, %arg1, %c3_i32 : i32
    %16 = arith.extui %15 : i1 to i32
    %c0_i32_15 = arith.constant 0 : i32
    %17 = arith.cmpi ne, %16, %c0_i32_15 : i32
    scf.if %17 {
      %c0_16 = arith.constant 0 : index
      %c0_17 = arith.constant 0 : index
      %18 = vector.load %arg9[%c0_16, %c0_17] : memref<8x32xf32, #tpu.memory_space<vmem>>, vector<8x32xf32>
      %cst_18 = arith.constant 3.125000e-02 : f32
      %19 = vector.broadcast %cst_18 : f32 to vector<8x32xf32>
      %20 = arith.mulf %18, %19 : vector<8x32xf32>
      %c0_19 = arith.constant 0 : index
      %c0_20 = arith.constant 0 : index
      %21 = vector.load %arg10[%c0_19, %c0_20] : memref<8x32xf32, #tpu.memory_space<vmem>>, vector<8x32xf32>
      %cst_21 = arith.constant 3.125000e-02 : f32
      %22 = vector.broadcast %cst_21 : f32 to vector<8x32xf32>
      %23 = arith.mulf %21, %22 : vector<8x32xf32>
      %24 = arith.subf %20, %23 : vector<8x32xf32>
      %25 = math.absf %24 : vector<8x32xf32>
      %26 = arith.mulf %20, %23 : vector<8x32xf32>
      %c0_22 = arith.constant 0 : index
      %c0_23 = arith.constant 0 : index
      %27 = vector.load %arg4[%c0_22, %c0_23] : memref<128x64xf32, #tpu.memory_space<vmem>>, vector<32x64xf32>
      %cst_24 = arith.constant dense<0.000000e+00> : vector<8x64xf32>
      %28 = tpu.matmul %20, %27, %cst_24 {dimension_numbers = #tpu.dot_dimension_numbers<[1], [0], [0], [1], [0, 0, 1, 1], [], []>} : vector<8x32xf32>, vector<32x64xf32>, vector<8x64xf32> -> vector<8x64xf32>
      %c32 = arith.constant 32 : index
      %c0_25 = arith.constant 0 : index
      %29 = vector.load %arg4[%c32, %c0_25] : memref<128x64xf32, #tpu.memory_space<vmem>>, vector<32x64xf32>
      %cst_26 = arith.constant dense<0.000000e+00> : vector<8x64xf32>
      %30 = tpu.matmul %23, %29, %cst_26 {dimension_numbers = #tpu.dot_dimension_numbers<[1], [0], [0], [1], [0, 0, 1, 1], [], []>} : vector<8x32xf32>, vector<32x64xf32>, vector<8x64xf32> -> vector<8x64xf32>
      %31 = arith.addf %28, %30 : vector<8x64xf32>
      %c64 = arith.constant 64 : index
      %c0_27 = arith.constant 0 : index
      %32 = vector.load %arg4[%c64, %c0_27] : memref<128x64xf32, #tpu.memory_space<vmem>>, vector<32x64xf32>
      %cst_28 = arith.constant dense<0.000000e+00> : vector<8x64xf32>
      %33 = tpu.matmul %25, %32, %cst_28 {dimension_numbers = #tpu.dot_dimension_numbers<[1], [0], [0], [1], [0, 0, 1, 1], [], []>} : vector<8x32xf32>, vector<32x64xf32>, vector<8x64xf32> -> vector<8x64xf32>
      %34 = arith.addf %31, %33 : vector<8x64xf32>
      %c96 = arith.constant 96 : index
      %c0_29 = arith.constant 0 : index
      %35 = vector.load %arg4[%c96, %c0_29] : memref<128x64xf32, #tpu.memory_space<vmem>>, vector<32x64xf32>
      %cst_30 = arith.constant dense<0.000000e+00> : vector<8x64xf32>
      %36 = tpu.matmul %26, %35, %cst_30 {dimension_numbers = #tpu.dot_dimension_numbers<[1], [0], [0], [1], [0, 0, 1, 1], [], []>} : vector<8x32xf32>, vector<32x64xf32>, vector<8x64xf32> -> vector<8x64xf32>
      %37 = arith.addf %34, %36 : vector<8x64xf32>
      %c0_31 = arith.constant 0 : index
      %c0_32 = arith.constant 0 : index
      %38 = vector.load %arg5[%c0_31, %c0_32] : memref<1x64xf32, #tpu.memory_space<vmem>>, vector<1x64xf32>
      %39 = vector.broadcast %38 : vector<1x64xf32> to vector<8x64xf32>
      %40 = arith.addf %37, %39 : vector<8x64xf32>
      %cst_33 = arith.constant 0.000000e+00 : f32
      %41 = vector.broadcast %cst_33 : f32 to vector<8x64xf32>
      %42 = arith.maximumf %40, %41 : vector<8x64xf32>
      %c0_34 = arith.constant 0 : index
      %c0_35 = arith.constant 0 : index
      %43 = vector.load %arg6[%c0_34, %c0_35] : memref<64x128xf32, #tpu.memory_space<vmem>>, vector<64x128xf32>
      %cst_36 = arith.constant dense<0.000000e+00> : vector<8x128xf32>
      %44 = tpu.matmul %42, %43, %cst_36 {dimension_numbers = #tpu.dot_dimension_numbers<[1], [0], [0], [1], [0, 0, 1, 1], [], []>} : vector<8x64xf32>, vector<64x128xf32>, vector<8x128xf32> -> vector<8x128xf32>
      %c0_37 = arith.constant 0 : index
      %c0_38 = arith.constant 0 : index
      %45 = vector.load %arg7[%c0_37, %c0_38] : memref<1x128xf32, #tpu.memory_space<vmem>>, vector<1x128xf32>
      %46 = vector.broadcast %45 : vector<1x128xf32> to vector<8x128xf32>
      %47 = arith.addf %44, %46 : vector<8x128xf32>
      %c0_39 = arith.constant 0 : index
      %c0_40 = arith.constant 0 : index
      %48 = vector.load %arg8[%c0_39, %c0_40] : memref<8x128xf32, #tpu.memory_space<vmem>>, vector<8x128xf32>
      tpu.vector_store %arg8[%c0_39, %c0_40], %47 {strides = array<i32>} : memref<8x128xf32, #tpu.memory_space<vmem>>, vector<8x128xf32>,
    } else {
    }
    return
  }
  func.func @transform_0(%arg0: i32, %arg1: i32) -> (i32, i32, i32) {
    %c0_i32 = arith.constant 0 : i32
    %c0_i32_0 = arith.constant 0 : i32
    return %arg0, %arg1, %c0_i32 : i32, i32, i32
  }
  func.func @transform_1(%arg0: i32, %arg1: i32) -> (i32, i32, i32) {
    %c0_i32 = arith.constant 0 : i32
    %c0_i32_0 = arith.constant 0 : i32
    return %arg0, %arg1, %c0_i32 : i32, i32, i32
  }
  func.func @transform_2(%arg0: i32, %arg1: i32) -> (i32, i32) {
    %c0_i32 = arith.constant 0 : i32
    %c0_i32_0 = arith.constant 0 : i32
    %c0_i32_1 = arith.constant 0 : i32
    return %c0_i32, %c0_i32_0 : i32, i32
  }
  func.func @transform_3(%arg0: i32, %arg1: i32) -> (i32, i32) {
    %c0_i32 = arith.constant 0 : i32
    %c0_i32_0 = arith.constant 0 : i32
    %c0_i32_1 = arith.constant 0 : i32
    return %c0_i32, %c0_i32_0 : i32, i32
  }
  func.func @transform_4(%arg0: i32, %arg1: i32) -> (i32, i32) {
    %c0_i32 = arith.constant 0 : i32
    %c0_i32_0 = arith.constant 0 : i32
    %c0_i32_1 = arith.constant 0 : i32
    return %c0_i32, %c0_i32_0 : i32, i32
  }
  func.func @transform_5(%arg0: i32, %arg1: i32) -> (i32, i32) {
    %c0_i32 = arith.constant 0 : i32
    %c0_i32_0 = arith.constant 0 : i32
    %c0_i32_1 = arith.constant 0 : i32
    return %c0_i32, %c0_i32_0 : i32, i32
  }
  func.func @transform_6(%arg0: i32, %arg1: i32) -> (i32, i32) {
    %c0_i32 = arith.constant 0 : i32
    %c0_i32_0 = arith.constant 0 : i32
    return %arg0, %c0_i32 : i32, i32
  }
}

</mosaic_0001>

<bundles_post_ra>
// kernel: tpu_custom_call.1
= control target key start
LH: loop header
LB: loop body
LE: loop exit
PB: predicated region body
PF: predicated region fallthrough
CT: control target
= control target key end

     0   :  { %11 = vsyncpa [#allocation6], 0  ;;  %s1718_s0 = inlined_call_operand.vmem [shape: bf16[8,32,32], index: 0, kind: input, shape index: {}]   ;;  %s1719_s1 = inlined_call_operand.hbm [shape: bf16[8,32,32], index: 1, kind: input, shape index: {}]   ;;  %s1720_s2 = inlined_call_operand.vmem [shape: f32[128,64], index: 2, kind: input, shape index: {}]   ;;  %s1721_s3 = inlined_call_operand.vmem [shape: f32[1,64], index: 3, kind: input, shape index: {}]   ;;  %s1722_s4 = inlined_call_operand.vmem [shape: f32[64,128], index: 4, kind: input, shape index: {}]   ;;  %s1723_s5 = inlined_call_operand.vmem [shape: f32[1,128], index: 5, kind: input, shape index: {}]   ;;  %s1724_s6 = inlined_call_operand.hbm [shape: f32[8,128], index: 6, kind: output, shape index: {}]  }
   0x1   :  { %13 = vsyncpa [#allocation6 + $0x1], 0 }
   0x2   :  { %14 = vsyncpa [#allocation7], 0  ;;  %s1451_s21 = smov 0   ;;  %s1453_s22 = smov 0  }
   0x3   :  { %s1455_s23 = smov 0   ;;  %s1457_s24 = smov 0  }
   0x4   :  { %s1459_s25 = smov 0   ;;  %s1461_s26 = smov 0  }
   0x5 LB: > { %s1086_s27 = sadd.s32 4294967295, %s1406_s26   ;;  %s29_s28 = sadd.s32 1, %s1402_s25  ;;  %s1406_s26 = sphi %s1461_s26, %s20_s26   ;;  %s1402_s25 = sphi %s1459_s25, %s1732_s25   ;;  %s1398_s24 = sphi %s1457_s24, %s1731_s24   ;;  %s1394_s23 = sphi %s1455_s23, %s1730_s23   ;;  %s1390_s22 = sphi %s1453_s22, %s1729_s22   ;;  %s1386_s21 = sphi %s1451_s21, %s1728_s21  }
   0x6   : > { %p30_p0 = scmp.ge.s32.totalorder %s29_s28, 4  ;;  %s41_s29 = sadd.s32 1, %s1394_s23 }
   0x7   : > { %p48_p1 = scmp.ne.s32.totalorder %s1394_s23, %s1390_s22  ;;  %p49_p2 = scmp.eq.s32.totalorder %s1406_s26, 0 }
   0x8   : > { %s1734_s28 = smov (%p30_p0, %s29_s28), 0  ;;  %p82_p4 = scmp.ne.s32.totalorder %s1390_s22, %s1386_s21 }
   0x9   : > { %p1487_p3 = por %p49_p2, %p48_p1  ;;  %s37_s7 = ssub.s32 %s1402_s25, %s1734_s28 }
   0xa   : > { %p83_p5 = scmp.eq.s32.totalorder %s1086_s27, 0  ;;  %p39_p6 = scmp.eq.s32.totalorder %s37_s7, 0 }
   0xb   : > { %p1088_p8 = scmp.ge.s32.totalorder %s1406_s26, 4 }
   0xc   : > { %p1496_p7 = por %p83_p5, %p82_p4 }
   0xd   : > { %s1501_s9 = scalar_select %p39_p6, %s1394_s23, %s41_s29  }
   0xe   : > { %224 = sbr.rel (%p1088_p8) target bundleno = 45 (0x2d), region = 32 }
  0x13   : > { %227 = sbr.rel (!%p1487_p3) target bundleno = 28 (0x1c), region = 36  ;;  %s229_s10 = sand.u32 (%p1487_p3), 1, %s1394_s23  }
  0x14   : > { %s1090_s11 = sshll.u32 (%p1487_p3), %s1402_s25, 2  ;;  %s1089_s12 = sshll.u32 (%p1487_p3), %s229_s10, 5 }
  0x15   : > { %s236_s15 = scalar_lea.vmem (%p1487_p3), %s1718_s0, %s1090_s11  ;;  %s231_s16 = scalar_lea.vmem (%p1487_p3), [#allocation4], %s1089_s12 }
  0x16   : > { %v253_v0 = vld [vmem:[%s236_s15] sm:$0xf] (%p1487_p3)  ;;  %v255_v1 = vld [vmem:[%s236_s15 + $0x10] sm:$0xf] (%p1487_p3) }
  0x17   : > { %254 = vst [vmem:[%s231_s16] sm:$0xf] (%p1487_p3), %v253_v0  ;;  %256 = vst [vmem:[%s231_s16 + $0x4] sm:$0xf] (%p1487_p3), %v255_v1  ;;  %v257_v2 = vld [vmem:[%s236_s15 + $0x20] sm:$0xf] (%p1487_p3) }
  0x18   : > { %v259_v3 = vld [vmem:[%s236_s15 + $0x30] sm:$0xf]  ;;  %v261_v4 = vld [vmem:[%s236_s15 + $0x40] sm:$0xf]  ;;  %258 = vst [vmem:[%s231_s16 + $0x8] sm:$0xf] %v257_v2 }
  0x19   : > { %260 = vst [vmem:[%s231_s16 + $0xc] sm:$0xf] %v259_v3  ;;  %262 = vst [vmem:[%s231_s16 + $0x10] sm:$0xf] %v261_v4  ;;  %v263_v5 = vld [vmem:[%s236_s15 + $0x50] sm:$0xf] }
  0x1a   : > { %v265_v6 = vld [vmem:[%s236_s15 + $0x60] sm:$0xf]  ;;  %v267_v7 = vld [vmem:[%s236_s15 + $0x70] sm:$0xf]  ;;  %264 = vst [vmem:[%s231_s16 + $0x14] sm:$0xf] %v263_v5 }
  0x1b   : > { %266 = vst [vmem:[%s231_s16 + $0x18] sm:$0xf] %v265_v6  ;;  %268 = vst [vmem:[%s231_s16 + $0x1c] sm:$0xf] %v267_v7 }
  0x1c PF: > { %s309_s17 = sand.u32 1, %s1394_s23   ;;  %s1092_s18 = sshll.u32 %s1402_s25, 6 }
  0x1d   : > { %s1091_s19 = sshll.u32 %s309_s17, 5  ;;  %s321_s29 = scalar_lea.hbm %s1719_s1, %s1092_s18 }
  0x1e   : > { %s313_s7 = scalar_lea.vmem [#allocation5], %s1091_s19  ;;  %s310_s11 = scalar_lea.sflag [#allocation6], %s309_s17 }
  0x1f   : > { %s322_s10 = sshll.u32 %s313_s7, 4  ;;  %s1408_s13 = smov [#allocation5]   ;;  %s323_s10 = int_to_ptr.vmem [resolvable:$true] %s322_s10 }
  0x20   : > { %s1314_s12 = scalar_lea.vmem %s323_s10, 512  ;;  %s1318_s14 = sshll.u32 %s1408_s13, 4  ;;  %s1319_s14 = int_to_ptr.vmem [resolvable:$false] %s1318_s14 }
  0x21   : > { %p1315_p9 = scmp.ne.s32.totalorder %s323_s10, %s1314_s12  ;;  %s1320_s15 = scalar_lea.vmem %s1319_s14, 1024 }
  0x22   : > { %p1321_p12 = scmp.lt.s32.totalorder %s323_s10, %s1319_s14  ;;  %p1322_p13 = scmp.lt.s32.totalorder %s1320_s15, %s1314_s12 }
  0x23   : > { %p1316_p10 = pnand %p1315_p9, %p1487_p3 }
  0x24   : > { %p1323_p0 = por %p1322_p13, %p1321_p12 }
  0x25   : > { %p1317_p11 = pneg %p1316_p10 }
  0x27   : > { %p1324_p1 = pnand %p1323_p0, %p1317_p11 }
  0x29   : > { %1327 = shalt.err (!%p1324_p1)
}
  0x2a   : > { %s1409_s16 = smov 256   ;;  %s1410_s18 = smov 64  }
  0x2b   : > { %s1411_s19 = smov 4  }
  0x2c   : > { %1239 = dma.hbm_to_vmem [thread:$0]  (%p1487_p3), %s321_s29, 512, %s323_s10, %s310_s11, %s1409_s16, %s1410_s18, %s1411_s19  }
  0x2d PF: > { %p1093_p2 = scmp.ge.s32.totalorder %s1406_s26, 1  ;;  %p330_p4 = scmp.lt.s32.totalorder %s1406_s26, 5 }
  0x2f   : > { %p331_p5 = pnand %p1093_p2, %p330_p4 }
  0x30   : > { %s337_s17 = sand.u32 (!%p331_p5), 1, %s1390_s22  }
  0x31   : > { %334 = sbr.rel (%p331_p5) target bundleno = 544 (0x220), region = 81  ;;  %s1094_s20 = sshll.u32 (!%p331_p5), %s337_s17, 5 }
  0x32   : > { %s339_s21 = scalar_lea.vmem (!%p331_p5), [#allocation4], %s1094_s20  ;;  %s344_s7 = scalar_lea.sflag (!%p331_p5), [#allocation6], %s337_s17 }
  0x33   : > { %s1523_s12 = scalar_lea.vmem (!%p331_p5), [#allocation5], %s1094_s20 }
  0x36   : > { %1377 = dma.done.wait (%p1496_p7), %s344_s7, 512  }
  0x37   : > { %1379 = vsyncadd (%p1496_p7), %s344_s7, 4294966784  ;;  %p1096_p3 = scmp.ne.s32.totalorder %s1398_s24, 0 }
  0x39   : > { %380 = sbr.rel (%p1096_p3) target bundleno = 64 (0x40), region = 93 }
  0x3e   : > { %vm381_vm0 = vcmask 261120   ;;  %v1412_v8 = vmov 0.0  }
  0x3f   : > { %382 = vst.msk [vmem:[#allocation2] sm:$0xff] %vm381_vm0, %v1412_v8  ;;  %383 = vst.msk [vmem:[#allocation3] sm:$0xff] %vm381_vm0, %v1412_v8 }
  0x40 PF: > { %v1110_v9 = vld [vmem:[%s339_s21] sm:$0xff]   ;;  %v1141_v10 = vld [vmem:[%s339_s21 + $0x8] sm:$0xff]   ;;  %vm401_vm1 = vcmask 261120   ;;  %v1142_v15 = vld [vmem:[%s339_s21 + $0x10] sm:$0xff]   ;;  %vm466_vm2 = vcmask 1041409   ;;  %vm468_vm3 = vcmask 1042434  }
  0x41   : > { %v1111_v11 = vunpack.c.l.bf16 %v1110_v9  ;;  %v1112_v12 = vunpack.c.h.bf16 %v1110_v9  ;;  %v1115_v13 = vunpack.c.l.bf16 %v1141_v10  ;;  %v1116_v14 = vunpack.c.h.bf16 %v1141_v10  ;;  %v1143_v16 = vld [vmem:[%s339_s21 + $0x18] sm:$0xff]   ;;  %v1126_v9 = vld [vmem:[%s1523_s12] sm:$0xff]   ;;  %p1097_p6 = scmp.ne.s32.totalorder %s1398_s24, 3 }
  0x42   : > { %v1119_v17 = vunpack.c.l.bf16 %v1142_v15  ;;  %v1120_v18 = vunpack.c.h.bf16 %v1142_v15  ;;  %v1123_v19 = vunpack.c.l.bf16 %v1143_v16  ;;  %v1124_v20 = vunpack.c.h.bf16 %v1143_v16  ;;  %v1145_v16 = vld [vmem:[%s1523_s12 + $0x10] sm:$0xff]  }
  0x43   : > { %v402_v21 = vsel %vm401_vm1, %v1111_v11, 0.0  ;;  %v409_v22 = vsel %vm401_vm1, %v1112_v12, 0.0  ;;  %v416_v23 = vsel %vm401_vm1, %v1115_v13, 0.0  ;;  %v423_v24 = vsel %vm401_vm1, %v1116_v14, 0.0  ;;  %v1144_v11 = vld [vmem:[%s1523_s12 + $0x8] sm:$0xff]  }
  0x44   : > { %v403_v25 = vrot.slane %v402_v21, 4  ;;  %v410_v26 = vrot.slane %v409_v22, 4  ;;  %v417_v27 = vrot.slane %v416_v23, 4  ;;  %v424_v28 = vrot.slane %v423_v24, 4 }
  0x45   : > { %v430_v29 = vsel %vm401_vm1, %v1119_v17, 0.0  ;;  %v437_v30 = vsel %vm401_vm1, %v1120_v18, 0.0  ;;  %v444_v31 = vsel %vm401_vm1, %v1123_v19, 0.0  ;;  %v451_v32 = vsel %vm401_vm1, %v1124_v20, 0.0  ;;  %v1146_v17 = vld [vmem:[%s1523_s12 + $0x18] sm:$0xff]  }
  0x46   : > { %v404_v33 = vadd.f32 %v403_v25, %v402_v21  ;;  %v411_v34 = vadd.f32 %v410_v26, %v409_v22  ;;  %v418_v35 = vadd.f32 %v417_v27, %v416_v23  ;;  %v425_v36 = vadd.f32 %v424_v28, %v423_v24  ;;  %v384_v28 = vld [vmem:[#allocation2] sm:$0xff] }
  0x47   : > { %v431_v37 = vrot.slane %v430_v29, 4  ;;  %v438_v38 = vrot.slane %v437_v30, 4  ;;  %v445_v39 = vrot.slane %v444_v31, 4  ;;  %v452_v40 = vrot.slane %v451_v32, 4 }
  0x48   : > { %v405_v41 = vrot.slane %v404_v33, 2  ;;  %v412_v42 = vrot.slane %v411_v34, 2  ;;  %v419_v43 = vrot.slane %v418_v35, 2  ;;  %v426_v44 = vrot.slane %v425_v36, 2 }
  0x49   : > { %v432_v45 = vadd.f32 %v431_v37, %v430_v29  ;;  %v439_v46 = vadd.f32 %v438_v38, %v437_v30  ;;  %v446_v47 = vadd.f32 %v445_v39, %v444_v31  ;;  %v453_v48 = vadd.f32 %v452_v40, %v451_v32 }
  0x4a   : > { %v406_v49 = vadd.f32 %v405_v41, %v404_v33  ;;  %v413_v50 = vadd.f32 %v412_v42, %v411_v34  ;;  %v420_v51 = vadd.f32 %v419_v43, %v418_v35  ;;  %v427_v52 = vadd.f32 %v426_v44, %v425_v36 }
  0x4b   : > { %v433_v53 = vrot.slane %v432_v45, 2  ;;  %v440_v54 = vrot.slane %v439_v46, 2  ;;  %v447_v55 = vrot.slane %v446_v47, 2  ;;  %v454_v56 = vrot.slane %v453_v48, 2 }
  0x4c   : > { %v407_v57 = vrot.slane %v406_v49, 1  ;;  %v414_v58 = vrot.slane %v413_v50, 1  ;;  %v421_v59 = vrot.slane %v420_v51, 1  ;;  %v428_v60 = vrot.slane %v427_v52, 1 }
  0x4d   : > { %v434_v61 = vadd.f32 %v433_v53, %v432_v45  ;;  %v441_v62 = vadd.f32 %v440_v54, %v439_v46  ;;  %v448_v63 = vadd.f32 %v447_v55, %v446_v47  ;;  %v455_v0 = vadd.f32 %v454_v56, %v453_v48 }
  0x4e   : > { %v408_v1 = vadd.f32 %v407_v57, %v406_v49  ;;  %v415_v2 = vadd.f32 %v414_v58, %v413_v50  ;;  %v422_v3 = vadd.f32 %v421_v59, %v420_v51  ;;  %v429_v4 = vadd.f32 %v428_v60, %v427_v52 }
  0x4f   : > { %v435_v5 = vrot.slane %v434_v61, 1  ;;  %v442_v6 = vrot.slane %v441_v62, 1  ;;  %v449_v7 = vrot.slane %v448_v63, 1  ;;  %v456_v8 = vrot.slane %v455_v0, 1 }
  0x50   : > { %v467_v10 = vsel %vm466_vm2, %v415_v2, %v408_v1  ;;  %vm470_vm4 = vcmask 1043459   ;;  %vm472_vm5 = vcmask 1044484   ;;  %vm474_vm6 = vcmask 1045509  }
  0x51   : > { %v436_v12 = vadd.f32 %v435_v5, %v434_v61  ;;  %v443_v13 = vadd.f32 %v442_v6, %v441_v62  ;;  %v450_v14 = vadd.f32 %v449_v7, %v448_v63  ;;  %v457_v15 = vadd.f32 %v456_v8, %v455_v0 }
  0x52   : > { %v469_v18 = vsel %vm468_vm3, %v422_v3, %v467_v10  ;;  %vm476_vm7 = vcmask 1046534   ;;  %vm478_vm8 = vcmask 1047559   ;;  %v1127_v19 = vunpack.c.l.bf16 %v1126_v9 }
  0x53   : > { %v471_v20 = vsel %vm470_vm4, %v429_v4, %v469_v18  ;;  %v1128_v21 = vunpack.c.h.bf16 %v1126_v9  ;;  %v1131_v22 = vunpack.c.l.bf16 %v1144_v11  ;;  %v1132_v23 = vunpack.c.h.bf16 %v1144_v11 }
  0x54   : > { %v473_v24 = vsel %vm472_vm5, %v436_v12, %v471_v20  ;;  %v1135_v25 = vunpack.c.l.bf16 %v1145_v16  ;;  %v1136_v26 = vunpack.c.h.bf16 %v1145_v16  ;;  %v1139_v27 = vunpack.c.l.bf16 %v1146_v17 }
  0x55   : > { %v475_v29 = vsel %vm474_vm6, %v443_v13, %v473_v24  ;;  %v1140_v30 = vunpack.c.h.bf16 %v1146_v17  ;;  %v500_v31 = vsel %vm401_vm1, %v1127_v19, 0.0  ;;  %v507_v32 = vsel %vm401_vm1, %v1128_v21, 0.0 }
  0x56   : > { %v477_v33 = vsel %vm476_vm7, %v450_v14, %v475_v29  ;;  %v501_v34 = vrot.slane %v500_v31, 4  ;;  %v508_v35 = vrot.slane %v507_v32, 4  ;;  %v514_v36 = vsel %vm401_vm1, %v1131_v22, 0.0 }
  0x57   : > { %v479_v37 = vsel %vm478_vm8, %v457_v15, %v477_v33  ;;  %v515_v38 = vrot.slane %v514_v36, 4  ;;  %v521_v39 = vsel %vm401_vm1, %v1132_v23, 0.0  ;;  %v528_v40 = vsel %vm401_vm1, %v1135_v25, 0.0 }
  0x58   : > { %v481_v41 = vadd.f32 %v479_v37, %v384_v28  ;;  %v502_v42 = vadd.f32 %v501_v34, %v500_v31  ;;  %v509_v43 = vadd.f32 %v508_v35, %v507_v32  ;;  %v522_v44 = vrot.slane %v521_v39, 4 }
  0x59   : > { %v516_v45 = vadd.f32 %v515_v38, %v514_v36  ;;  %v529_v46 = vrot.slane %v528_v40, 4  ;;  %v535_v47 = vsel %vm401_vm1, %v1136_v26, 0.0  ;;  %v542_v48 = vsel %vm401_vm1, %v1139_v27, 0.0 }
  0x5a   : > { %482 = vst.msk [vmem:[#allocation2] sm:$0xff] %vm401_vm1, %v481_v41  ;;  %v503_v49 = vrot.slane %v502_v42, 2  ;;  %v510_v50 = vrot.slane %v509_v43, 2  ;;  %v523_v51 = vadd.f32 %v522_v44, %v521_v39  ;;  %v536_v52 = vrot.slane %v535_v47, 4 }
  0x5b   : > { %v517_v53 = vrot.slane %v516_v45, 2  ;;  %v530_v54 = vadd.f32 %v529_v46, %v528_v40  ;;  %v543_v55 = vrot.slane %v542_v48, 4  ;;  %v549_v56 = vsel %vm401_vm1, %v1140_v30, 0.0  ;;  %v483_v30 = vld [vmem:[#allocation3] sm:$0xff] }
  0x5c   : > { %v504_v57 = vadd.f32 %v503_v49, %v502_v42  ;;  %v511_v58 = vadd.f32 %v510_v50, %v509_v43  ;;  %v524_v59 = vrot.slane %v523_v51, 2  ;;  %v537_v60 = vadd.f32 %v536_v52, %v535_v47 }
  0x5d   : > { %v518_v61 = vadd.f32 %v517_v53, %v516_v45  ;;  %v531_v62 = vrot.slane %v530_v54, 2  ;;  %v544_v63 = vadd.f32 %v543_v55, %v542_v48  ;;  %v550_v0 = vrot.slane %v549_v56, 4 }
  0x5e   : > { %v505_v1 = vrot.slane %v504_v57, 1  ;;  %v512_v2 = vrot.slane %v511_v58, 1  ;;  %v525_v3 = vadd.f32 %v524_v59, %v523_v51  ;;  %v538_v4 = vrot.slane %v537_v60, 2 }
  0x5f   : > { %v519_v5 = vrot.slane %v518_v61, 1  ;;  %v532_v6 = vadd.f32 %v531_v62, %v530_v54  ;;  %v545_v7 = vrot.slane %v544_v63, 2  ;;  %v551_v8 = vadd.f32 %v550_v0, %v549_v56 }
  0x60   : > { %v506_v9 = vadd.f32 %v505_v1, %v504_v57  ;;  %v513_v10 = vadd.f32 %v512_v2, %v511_v58  ;;  %v526_v11 = vrot.slane %v525_v3, 1  ;;  %v539_v12 = vadd.f32 %v538_v4, %v537_v60 }
  0x61   : > { %v520_v13 = vadd.f32 %v519_v5, %v518_v61  ;;  %v533_v14 = vrot.slane %v532_v6, 1  ;;  %v546_v15 = vadd.f32 %v545_v7, %v544_v63  ;;  %v552_v16 = vrot.slane %v551_v8, 2 }
  0x62   : > { %v527_v17 = vadd.f32 %v526_v11, %v525_v3  ;;  %v540_v18 = vrot.slane %v539_v12, 1  ;;  %v564_v19 = vsel %vm466_vm2, %v513_v10, %v506_v9 }
  0x63   : > { %v534_v20 = vadd.f32 %v533_v14, %v532_v6  ;;  %v547_v21 = vrot.slane %v546_v15, 1  ;;  %v553_v22 = vadd.f32 %v552_v16, %v551_v8  ;;  %v565_v23 = vsel %vm468_vm3, %v520_v13, %v564_v19 }
  0x64   : > { %v541_v24 = vadd.f32 %v540_v18, %v539_v12  ;;  %v566_v25 = vsel %vm470_vm4, %v527_v17, %v565_v23 }
  0x65   : > { %v548_v26 = vadd.f32 %v547_v21, %v546_v15  ;;  %v554_v27 = vrot.slane %v553_v22, 1  ;;  %v567_v28 = vsel %vm472_vm5, %v534_v20, %v566_v25 }
  0x66   : > { %v568_v29 = vsel %vm474_vm6, %v541_v24, %v567_v28 }
  0x67   : > { %v555_v31 = vadd.f32 %v554_v27, %v553_v22  ;;  %v569_v32 = vsel %vm476_vm7, %v548_v26, %v568_v29 }
  0x68   : > { %577 = sbr.rel (%p1097_p6) target bundleno = 529 (0x211), region = 97 }
  0x69   : > { %v570_v33 = vsel %vm478_vm8, %v555_v31, %v569_v32 }
  0x6a   : > { %v572_v34 = vadd.f32 %v570_v33, %v483_v30 }
  0x6c   : > { %573 = vst.msk [vmem:[#allocation3] sm:$0xff] %vm401_vm1, %v572_v34 }
  0x6d   : > { %v592_v35 = vld [vmem:[%s1720_s2 + $0x38] sm:$0xff]  ;;  %v1413_v36 = vmov 0.0   ;;  %v591_v37 = vld [vmem:[%s1720_s2 + $0x30] sm:$0xff]  ;;  %vm1414_vm9 = vmmov 0   ;;  %v590_v40 = vld [vmem:[%s1720_s2 + $0x28] sm:$0xff]  ;;  %vm919_vm10 = vcmask 523264  }
  0x6e   : > { %1176 = vmatprep.subr.mxu1 %v1413_v36  ;;  %1184 = vmatprep.mubr.msk.f32.mxu1 %vm1414_vm9, %v1413_v36  ;;  %v742_v39 = vld [vmem:[%s1720_s2 + $0x58] sm:$0xff]  ;;  %v741_v41 = vld [vmem:[%s1720_s2 + $0x50] sm:$0xff]  ;;  %v740_v42 = vld [vmem:[%s1720_s2 + $0x48] sm:$0xff] }
  0x6f   : > { %1177 = vmatpush3.msra.mxu1 %v592_v35  ;;  %1198 = vmatprep.subr.mxu0 %v1413_v36  ;;  %v578_v43 = vld [vmem:[#allocation2] sm:$0xff]  ;;  %v588_v47 = vld [vmem:[%s1720_s2 + $0x18] sm:$0xff]  ;;  %v587_v50 = vld [vmem:[%s1720_s2 + $0x10] sm:$0xff] }
  0x70   : > { %1178 = vmatprep.subr.mxu1 %v1413_v36  ;;  %1199 = vmatpush3.msra.mxu0 %v742_v39  ;;  %v589_v44 = vld [vmem:[%s1720_s2 + $0x20] sm:$0xff]  ;;  %v579_v46 = vmul.f32 0.03125, %v578_v43  ;;  %v586_v52 = vld [vmem:[%s1720_s2 + $0x8] sm:$0xff]  ;;  %v820_v54 = vld [vmem:[%s1720_s2 + $0x78] sm:$0xff] }
  0x71   : > { %1179 = vmatpush3.msra.mxu1 %v591_v37  ;;  %1200 = vmatprep.subr.mxu0 %v1413_v36  ;;  %v739_v49 = vld [vmem:[%s1720_s2 + $0x40] sm:$0xff]  ;;  %v819_v55 = vld [vmem:[%s1720_s2 + $0x70] sm:$0xff]  ;;  %v818_v56 = vld [vmem:[%s1720_s2 + $0x68] sm:$0xff] }
  0x72   : > { %1180 = vmatprep.subr.mxu1 %v1413_v36  ;;  %1201 = vmatpush3.msra.mxu0 %v741_v41  ;;  %v585_v53 = vld [vmem:[%s1720_s2] sm:$0xff]  ;;  %v911_v59 = vld [vmem:[%s1722_s4 + $0x38] sm:$0xff]  ;;  %v910_v60 = vld [vmem:[%s1722_s4 + $0x30] sm:$0xff] }
  0x73   : > { %v580_v38 = vld [vmem:[#allocation3] sm:$0xff]  ;;  %1181 = vmatpush3.msra.mxu1 %v590_v40  ;;  %1202 = vmatprep.subr.mxu0 %v1413_v36  ;;  %v817_v57 = vld [vmem:[%s1720_s2 + $0x60] sm:$0xff]  ;;  %v907_v63 = vld [vmem:[%s1722_s4 + $0x18] sm:$0xff] }
  0x74   : > { %v581_v45 = vmul.f32 0.03125, %v580_v38  ;;  %1182 = vmatprep.subr.mxu1 %v1413_v36  ;;  %1203 = vmatpush3.msra.mxu0 %v740_v42  ;;  %v909_v61 = vld [vmem:[%s1722_s4 + $0x28] sm:$0xff]  ;;  %v908_v62 = vld [vmem:[%s1722_s4 + $0x20] sm:$0xff]  ;;  %v906_v0 = vld [vmem:[%s1722_s4 + $0x10] sm:$0xff] }
  0x75   : > { %1183 = vmatpush3.msra.mxu1 %v589_v44  ;;  %1204 = vmatprep.subr.mxu0 %v1413_v36  ;;  %v905_v1 = vld [vmem:[%s1722_s4 + $0x8] sm:$0xff]  ;;  %v904_v2 = vld [vmem:[%s1722_s4] sm:$0xff] }
  0x76   : > { %v582_v48 = vsub.f32 %v579_v46, %v581_v45  ;;  %1185 = vmatmul.mubr.msk.f32.vlgmr.msra.gmra.mxu1 %vm401_vm1, %v581_v45  ;;  %1187 = vmatprep.subr.mxu1 %v1413_v36  ;;  %v584_v58 = vmul.f32 %v581_v45, %v579_v46  ;;  %v1102_v12 = vld [vmem:[%s1721_s3] ss:$0 sm:$0xff] }
  0x77   : > { %1188 = vmatpush3.msra.mxu1 %v588_v47  ;;  %1195 = vmatprep.mubr.msk.f32.mxu1 %vm1414_vm9, %v1413_v36  ;;  %v1103_v17 = vld [vmem:[%s1723_s5] ss:$0 sm:$0xff] }
  0x78   : > { %v583_v51 = vand.u32 2147483647, %v582_v48  ;;  %1189 = vmatprep.subr.mxu1 %v1413_v36  ;;  %1205 = vmatpush3.msra.mxu0 %v739_v49 }
  0x79   : > { %1190 = vmatpush3.msra.mxu1 %v587_v50  ;;  %1206 = vmatprep.mubr.msk.f32.mxu0 %vm1414_vm9, %v1413_v36 }
  0x7a   : > { %1191 = vmatprep.subr.mxu1 %v1413_v36  ;;  %1207 = vmatmul.mubr.msk.f32.vlgmr.msra.gmra.mxu0 %vm401_vm1, %v583_v51 }
  0x7b   : > { %1192 = vmatpush3.msra.mxu1 %v586_v52  ;;  %1220 = vmatprep.subr.mxu0 %v1413_v36 }
  0x7c   : > { %1193 = vmatprep.subr.mxu1 %v1413_v36  ;;  %1236 = vmatprep.mubr.msk.f32.mxu0 %vm1414_vm9, %v1413_v36 }
  0x7d   : > { %1194 = vmatpush3.msra.mxu1 %v585_v53  ;;  %1221 = vmatpush3.msra.mxu0 %v911_v59 }
  0x7e   : > { %1196 = vmatmul.mubr.msk.f32.vlgmr.msra.gmra.mxu1 %vm401_vm1, %v579_v46  ;;  %1209 = vmatprep.subr.mxu1 %v1413_v36 }
  0x7f   : > { %1210 = vmatpush3.msra.mxu1 %v820_v54  ;;  %1217 = vmatprep.mubr.msk.f32.mxu1 %vm1414_vm9, %v1413_v36 }
  0x80   : > { %1211 = vmatprep.subr.mxu1 %v1413_v36  ;;  %1222 = vmatprep.subr.mxu0 %v1413_v36 }
  0x81   : > { %1212 = vmatpush3.msra.mxu1 %v819_v55  ;;  %1223 = vmatpush3.msra.mxu0 %v910_v60 }
  0x82   : > { %1213 = vmatprep.subr.mxu1 %v1413_v36  ;;  %1224 = vmatprep.subr.mxu0 %v1413_v36 }
  0x83   : > { %1214 = vmatpush3.msra.mxu1 %v818_v56  ;;  %1225 = vmatpush3.msra.mxu0 %v909_v61 }
  0x84   : > { %1215 = vmatprep.subr.mxu1 %v1413_v36  ;;  %1226 = vmatprep.subr.mxu0 %v1413_v36 }
  0x85   : > { %1216 = vmatpush3.msra.mxu1 %v817_v57  ;;  %1227 = vmatpush3.msra.mxu0 %v908_v62 }
  0x86   : > { %1218 = vmatmul.mubr.msk.f32.vlgmr.msra.gmra.mxu1 %vm401_vm1, %v584_v58  ;;  %1228 = vmatprep.subr.mxu0 %v1413_v36 }
  0x87   : > { %1229 = vmatpush3.msra.mxu0 %v907_v63 }
  0x88   : > { %1230 = vmatprep.subr.mxu0 %v1413_v36 }
  0x89   : > { %1231 = vmatpush3.msra.mxu0 %v906_v0 }
  0x8a   : > { %1232 = vmatprep.subr.mxu0 %v1413_v36 }
  0x8b   : > { %1233 = vmatpush3.msra.mxu0 %v905_v1 }
  0x8c   : > { %1234 = vmatprep.subr.mxu0 %v1413_v36 }
  0x8d   : > { %1235 = vmatpush3.msra.mxu0 %v904_v2 }
 0x136   : > { %v662_v3 = vpop.f32.mrf.mxu1 }
 0x138   : > { %v1186_v4 = vpop.f32.mrf.mxu1 }
 0x13a   : > { %v812_v5 = vpop.f32.mrf.mxu0 }
 0x13c   : > { %v1208_v6 = vpop.f32.mrf.mxu0 }
 0x13e   : > { %v735_v7 = vpop.f32.mrf.mxu1 }
 0x13f   : > { %v736_v9 = vadd.f32 %v735_v7, %v662_v3 }
 0x140   : > { %v1197_v8 = vpop.f32.mrf.mxu1 }
 0x141   : > { %v816_v10 = vadd.f32 %v812_v5, %v736_v9 }
 0x146   : > { %v890_v11 = vpop.f32.mrf.mxu1 }
 0x147   : > { %v894_v13 = vadd.f32 %v890_v11, %v816_v10 }
 0x148   : > { %v1219_v14 = vpop.f32.mrf.mxu1 }
 0x149   : > { %v902_v15 = vadd.f32 %v1102_v12, %v894_v13 }
 0x14b   : > { %v903_v16 = vmax.f32 %v902_v15, 0.0 }
 0x14d   : > { %1237 = vmatmul.mubr.msk.f32.vlgmr.msra.gmra.mxu0 %vm919_vm10, %v903_v16 }
 0x20d   : > { %v989_v18 = vpop.f32.mrf.mxu0 }
 0x20e   : > { %v990_v19 = vadd.f32 %v1103_v17, %v989_v18 }
 0x20f   : > { %v1238_v20 = vpop.f32.mrf.mxu0 }
 0x210   : > { %993 = vst [vmem:[#allocation8] sm:$0xff] %v990_v19 }
 0x211 PF: > { %p1685_p7 = scmp.eq.s32.totalorder %s1086_s27, 3  ;;  %s1415_s29 = smov [#allocation8]  }
 0x212   : > { %s1003_s10 = sshll.u32 %s1415_s29, 4  ;;  %s1004_s10 = int_to_ptr.vmem [resolvable:$true] %s1003_s10 }
 0x213   : > { %s1328_s24 = scalar_lea.vmem %s1004_s10, 128  ;;  %p1335_p11 = scmp.lt.s32.totalorder %s1004_s10, %s1004_s10 }
 0x214   : > { %p1329_p8 = scmp.ne.s32.totalorder %s1004_s10, %s1328_s24  ;;  %p1336_p12 = scmp.lt.s32.totalorder %s1328_s24, %s1328_s24 }
 0x216   : > { %p1330_p9 = pnand %p1329_p8, %p1685_p7  ;;  %p1337_p13 = por %p1336_p12, %p1335_p11 }
 0x218   : > { %p1331_p10 = pneg %p1330_p9 }
 0x21a   : > { %p1338_p0 = pnand %p1337_p13, %p1331_p10 }
 0x21c   : > { %1341 = shalt.err (!%p1338_p0)
}
 0x21d   : > { %1242 = dma.vmem_to_hbm [thread:$0]  (%p1685_p7), %s1004_s10, 128, %s1724_s6, [#allocation7]  }
 0x21e   : > { %1381 = dma.done.wait (%p1685_p7), [#allocation7], 128  }
 0x21f   : > { %1383 = vsyncadd (%p1685_p7), [#allocation7], 4294967168 }
 0x220 PF: > { %s20_s26 = sadd.s32 1, %s1406_s26   ;;  %s1728_s21 = smov %s1390_s22 }
 0x221   : > { %p17_p1 = scmp.ge.s32.totalorder %s20_s26, 6   ;;  %s1729_s22 = smov %s1394_s23 }
 0x222   : > { %s1730_s23 = smov %s1501_s9  ;;  %s1731_s24 = smov %s1402_s25 }
 0x223   : > { %s1732_s25 = smov %s1734_s28  ;;  %19 = sbr.rel (!%p17_p1) target bundleno = 5 (0x5), region = 139 }
 0x228   :  { %1016 = vsyncpa [#allocation6], 1 }
 0x229   :  { %1018 = vsyncpa [#allocation6 + $0x1], 1 }
 0x22a   :  { %1019 = vsyncpa [#allocation7], 1 }
 0x22b   :  { %1021 = vsyncpa [#allocation7 + $0x1], 1 }

</bundles_post_ra>
